<compile_context>
chip_gen: v6e
topology: v6e:2x2x1
jax: 0.10.0
libtpu: 0.0.40
codegen_flags: <defaults>
</compile_context>

<pallas_src>
import functools

import jax
import jax.numpy as jnp
from jax.experimental import pallas as pl
from jax.experimental.pallas import tpu as pltpu


def _round_up(x, m):
    return ((x + m - 1) // m) * m


def _cdiv(a, b):
    return (a + b - 1) // b


def _device_kind():
    try:
        return jax.devices()[0].device_kind.lower()
    except Exception:
        return ""


def _cw_loss_kernel(logits_ref, targets_ref, partials_ref, *, tb, total_b, margin, upcast):
    """One batch tile: emit a lane-dense (1,1,128) partial sum of clamp(self-other+margin, 0)."""
    i = pl.program_id(0)

    logits = logits_ref[...]                                  # (TB, C) input dtype
    if upcast:
        logits = logits.astype(jnp.float32)
    cdt = logits.dtype
    tgt = targets_ref[...]                                    # (TB, 1) int32
    TB, C = logits.shape

    # Boolean one-hot mask via iota/compare (no gather, no float one-hot).
    class_ids = jax.lax.broadcasted_iota(jnp.int32, (TB, C), 1)
    mask = class_ids == tgt                                   # (TB, C) bool

    zero = jnp.asarray(0.0, dtype=cdt)
    neg1k = jnp.asarray(-1000.0, dtype=cdt)                   # exact in bf16

    # self_loss = logit at the target class (single non-zero term -> exact in bf16).
    self_loss = jnp.sum(jnp.where(mask, logits, zero),
                        axis=1, keepdims=True).astype(jnp.float32)      # (TB, 1)
    # other_loss = max over non-target logits; target slot pinned to -1000
    # (matches (1 - onehot)*logits - onehot*1000 of the reference).
    other_loss = jnp.max(jnp.where(mask, neg1k, logits),
                         axis=1, keepdims=True).astype(jnp.float32)     # (TB, 1)

    per_sample = jnp.maximum(self_loss - other_loss + margin, 0.0)      # (TB, 1) f32

    # Mask rows beyond the true batch (partial tail block reads garbage; the
    # select guarantees it never reaches the accumulated sum).
    row_ids = i * tb + jax.lax.broadcasted_iota(jnp.int32, (TB, 1), 0)
    per_sample = jnp.where(row_ids < total_b, per_sample, 0.0)

    partial = jnp.sum(per_sample)                                       # scalar f32

    # Lane-dense write: splat the partial across the 128-lane row; the wrapper
    # reads lane 0 of each tile.
    partials_ref[...] = jnp.zeros((1, 1, 128), jnp.float32) + partial


def cw_loss(logits, targets, *, margin=50.0, reduce=True, tb=None,
            xla_small_c_threshold=0):
    """logits: [B, C] float32/bf16, targets: [B] int -> scalar float32 loss."""
    B, C = logits.shape

    # Optional pure-XLA path for tiny, launch-overhead-dominated problems.
    if C < xla_small_c_threshold:
        return cw_loss_ref(logits, targets, margin=margin, reduce=reduce)

    kind = _device_kind()
    is_v5 = "v5" in kind
    is_v7 = "v7" in kind

    # bf16-native compute on generations with a bf16 VPU (v6e / v7x).
    upcast = not (logits.dtype == jnp.bfloat16 and not is_v5)

    itemsize = jnp.dtype(logits.dtype).itemsize
    sublane = max(8, 32 // itemsize)                 # 8 (f32), 16 (bf16), 32 (int8/fp8)

    # --- Tile-size selection with the real padded VMEM footprint --------------
    C_pad = _round_up(C, 128)                        # last dim pads to 128 lanes in VMEM
    bytes_per_row = C_pad * itemsize + 128 * 4       # logits row + padded (tb,1) int32 row
    # Generation-aware per-tile budget (double-buffered by BlockSpec pipelining).
    max_tile_bytes = (10 << 20) if (is_v7 or not kind) else (14 << 20)

    if tb is None:
        tb = max(sublane, (max_tile_bytes // max(bytes_per_row, 1)) // sublane * sublane)
        tb = min(tb, 4096)                           # amortized per-step overhead
        tb = min(tb, _round_up(B, sublane))          # don't exceed the batch
        # Guarantee >= 2 tiles on large batches so the "parallel" grid axis can
        # shard across both v7x TensorCores (harmless single extra step elsewhere).
        if B >= 256 and tb >= B:
            tb = _round_up(_cdiv(B, 2), sublane)
    tb = max(sublane, (int(tb) // sublane) * sublane)

    num_tiles = _cdiv(B, tb)                         # partial tail block, no padding

    targets_2d = targets.astype(jnp.int32).reshape(B, 1)

    kernel = functools.partial(
        _cw_loss_kernel, tb=tb, total_b=B, margin=float(margin), upcast=upcast
    )

    # Explicit VMEM limit covering double-buffered inputs + headroom, capped so
    # it is valid on v7x (64 MiB physical per TC).
    tile_bytes = tb * bytes_per_row
    vmem_limit = min(max(2 * tile_bytes + (4 << 20), 16 << 20), 48 << 20)

    cost = pl.CostEstimate(
        flops=5 * B * C,
        transcendentals=0,
        bytes_accessed=B * C * itemsize + B * 4 + num_tiles * 128 * 4,
    )

    partials = pl.pallas_call(
        kernel,
        out_shape=jax.ShapeDtypeStruct((num_tiles, 1, 128), jnp.float32),
        grid=(num_tiles,),
        in_specs=[
            pl.BlockSpec((tb, C), lambda i: (i, 0)),   # logits tile (partial tail OK)
            pl.BlockSpec((tb, 1), lambda i: (i, 0)),   # targets tile
        ],
        out_specs=pl.BlockSpec((1, 1, 128), lambda i: (i, 0, 0)),
        compiler_params=pltpu.CompilerParams(
            dimension_semantics=("parallel",),          # shard tiles across TCs (v7x)
            vmem_limit_bytes=int(vmem_limit),
        ),
        cost_estimate=cost,
    )(logits, targets_2d)

    loss = -jnp.sum(partials[:, 0, 0])
    if reduce:
        loss = loss / jnp.float32(B)                    # divide by TRUE batch size
    return loss


def cw_loss_ref(logits, targets, *, margin=50.0, reduce=True):
    """Pure-JAX reference for validation (mirrors the PyTorch module)."""
    B, C = logits.shape
    onehot = jax.nn.one_hot(targets, C, dtype=jnp.float32)
    lg = logits.astype(jnp.float32)
    self_loss = jnp.sum(onehot * lg, axis=1)
    other_loss = jnp.max((1.0 - onehot) * lg - onehot * 1000.0, axis=1)
    loss = -jnp.sum(jnp.maximum(self_loss - other_loss + margin, 0.0))
    if reduce:
        loss = loss / B
    return loss


if __name__ == "__main__":
    key = jax.random.PRNGKey(0)
    k1, k2, k3, k4, k5, k6 = jax.random.split(key, 6)

    # Case 1: small batch, single tile, f32.
    B, C = 8, 16
    logits = jax.random.normal(k1, (B, C), dtype=jnp.float32) * 5.0
    targets = jax.random.randint(k2, (B,), 0, C, dtype=jnp.int32)
    out = jax.block_until_ready(cw_loss(logits, targets, margin=50.0, reduce=True))
    ref = cw_loss_ref(logits, targets, margin=50.0, reduce=True)
    assert jnp.allclose(out, ref, atol=1e-4, rtol=1e-4), (out, ref)

    # Case 2: ragged batch -> multi-tile "parallel" grid with partial tail block
    # (no padding of logits), f32, reduce=True.
    B2, C2 = 50, 16
    logits2 = jax.random.normal(k3, (B2, C2), dtype=jnp.float32) * 5.0
    targets2 = jax.random.randint(k4, (B2,), 0, C2, dtype=jnp.int32)
    out2 = jax.block_until_ready(
        cw_loss(logits2, targets2, margin=50.0, reduce=True, tb=8)
    )
    ref2 = cw_loss_ref(logits2, targets2, margin=50.0, reduce=True)
    assert jnp.allclose(out2, ref2, atol=1e-4, rtol=1e-4), (out2, ref2)

    # Case 3: bf16 logits (native bf16 select/max on v6e/v7x, upcast on v5e),
    # ragged batch, reduce=False.
    B3, C3 = 40, 24
    logits3 = (jax.random.normal(k5, (B3, C3), dtype=jnp.float32) * 5.0).astype(jnp.bfloat16)
    targets3 = jax.random.randint(k6, (B3,), 0, C3, dtype=jnp.int32)
    out3 = jax.block_until_ready(
        cw_loss(logits3, targets3, margin=50.0, reduce=False, tb=16)
    )
    ref3 = cw_loss_ref(logits3, targets3, margin=50.0, reduce=False)
    assert jnp.allclose(out3, ref3, atol=1e-2, rtol=1e-3), (out3, ref3)

    print("KERNEL_OK")
</pallas_src>

<mosaic_0001>
module attributes {stable_mosaic.version = 11 : i64} {
  func.func @_cw_loss_kernel(%arg0: i32, %arg1: memref<8x16xf32, #tpu.memory_space<vmem>>, %arg2: memref<8x1xi32, #tpu.memory_space<vmem>>, %arg3: memref<1x1x128xf32, #tpu.memory_space<vmem>>) attributes {dimension_semantics = [#tpu.dimension_semantics<parallel>], iteration_bounds = array<i64: 1>, scalar_prefetch = 0 : i64, scratch_operands = 0 : i64, tpu.core_type = #tpu.core_type<tc>, window_params = [{transform_indices = @transform_0, window_bounds = array<i64: 8, 16>}, {transform_indices = @transform_1, window_bounds = array<i64: 8, 1>}, {transform_indices = @transform_2, window_bounds = array<i64: 1, 1, 128>}]} {
    %c0 = arith.constant 0 : index
    %c0_0 = arith.constant 0 : index
    %0 = vector.load %arg1[%c0, %c0_0] : memref<8x16xf32, #tpu.memory_space<vmem>>, vector<8x16xf32>
    %c0_1 = arith.constant 0 : index
    %c0_2 = arith.constant 0 : index
    %1 = vector.load %arg2[%c0_1, %c0_2] : memref<8x1xi32, #tpu.memory_space<vmem>>, vector<8x1xi32>
    %2 = tpu.iota {dimensions = array<i32: 1>} : vector<8x16xi32>
    %3 = vector.broadcast %1 : vector<8x1xi32> to vector<8x16xi32>
    %4 = arith.cmpi eq, %2, %3 : vector<8x16xi32>
    %cst = arith.constant 0.000000e+00 : f32
    %5 = vector.broadcast %cst : f32 to vector<8x16xf32>
    %6 = arith.select %4, %0, %5 : vector<8x16xi1>, vector<8x16xf32>
    %cst_3 = arith.constant dense<0.000000e+00> : vector<8xf32>
    %7 = vector.multi_reduction <add>, %6, %cst_3 [1] : vector<8x16xf32> to vector<8xf32>
    %8 = vector.shape_cast %7 : vector<8xf32> to vector<8x1xf32>
    %cst_4 = arith.constant -1.000000e+03 : f32
    %9 = vector.broadcast %cst_4 : f32 to vector<8x16xf32>
    %10 = arith.select %4, %9, %0 : vector<8x16xi1>, vector<8x16xf32>
    %cst_5 = arith.constant dense<0xFF800000> : vector<8xf32>
    %11 = vector.multi_reduction <maximumf>, %10, %cst_5 [1] : vector<8x16xf32> to vector<8xf32>
    %12 = vector.shape_cast %11 : vector<8xf32> to vector<8x1xf32>
    %13 = arith.subf %8, %12 : vector<8x1xf32>
    %cst_6 = arith.constant 5.000000e+01 : f32
    %14 = vector.broadcast %cst_6 : f32 to vector<8x1xf32>
    %15 = arith.addf %13, %14 : vector<8x1xf32>
    %cst_7 = arith.constant 0.000000e+00 : f32
    %16 = vector.broadcast %cst_7 : f32 to vector<8x1xf32>
    %17 = arith.maximumf %15, %16 : vector<8x1xf32>
    %c8_i32 = arith.constant 8 : i32
    %18 = arith.muli %arg0, %c8_i32 : i32
    %19 = tpu.iota {dimensions = array<i32: 0>} : vector<8x1xi32>
    %20 = vector.broadcast %18 : i32 to vector<8x1xi32>
    %21 = arith.addi %20, %19 : vector<8x1xi32>
    %c8_i32_8 = arith.constant 8 : i32
    %22 = vector.broadcast %c8_i32_8 : i32 to vector<8x1xi32>
    %23 = arith.cmpi slt, %21, %22 : vector<8x1xi32>
    %cst_9 = arith.constant 0.000000e+00 : f32
    %24 = vector.broadcast %cst_9 : f32 to vector<8x1xf32>
    %25 = arith.select %23, %17, %24 : vector<8x1xi1>, vector<8x1xf32>
    %26 = vector.shape_cast %25 : vector<8x1xf32> to vector<1x8x1xf32>
    %cst_10 = arith.constant dense<0.000000e+00> : vector<1xf32>
    %27 = vector.multi_reduction <add>, %26, %cst_10 [1, 2] : vector<1x8x1xf32> to vector<1xf32>
    %28 = vector.shape_cast %27 : vector<1xf32> to vector<1x1x1xf32>
    %29 = vector.extract %28[0, 0, 0] : f32 from vector<1x1x1xf32>
    %cst_11 = arith.constant 0.000000e+00 : f32
    %30 = vector.broadcast %cst_11 : f32 to vector<1x1x128xf32>
    %31 = vector.broadcast %29 : f32 to vector<1x1x128xf32>
    %32 = arith.addf %30, %31 : vector<1x1x128xf32>
    %c0_12 = arith.constant 0 : index
    %c0_13 = arith.constant 0 : index
    %c0_14 = arith.constant 0 : index
    %33 = vector.load %arg3[%c0_12, %c0_13, %c0_14] : memref<1x1x128xf32, #tpu.memory_space<vmem>>, vector<1x1x128xf32>
    tpu.vector_store %arg3[%c0_12, %c0_13, %c0_14], %32 {strides = array<i32>} : memref<1x1x128xf32, #tpu.memory_space<vmem>>, vector<1x1x128xf32>,
    return
  }
  func.func @transform_0(%arg0: i32) -> (i32, i32) {
    %c0_i32 = arith.constant 0 : i32
    %c0_i32_0 = arith.constant 0 : i32
    return %arg0, %c0_i32 : i32, i32
  }
  func.func @transform_1(%arg0: i32) -> (i32, i32) {
    %c0_i32 = arith.constant 0 : i32
    %c0_i32_0 = arith.constant 0 : i32
    return %arg0, %c0_i32 : i32, i32
  }
  func.func @transform_2(%arg0: i32) -> (i32, i32, i32) {
    %c0_i32 = arith.constant 0 : i32
    %c0_i32_0 = arith.constant 0 : i32
    %c0_i32_1 = arith.constant 0 : i32
    return %arg0, %c0_i32, %c0_i32_0 : i32, i32, i32
  }
}

</mosaic_0001>

<bundles_post_ra>
// kernel: tpu_custom_call.1
= control target key start
LH: loop header
LB: loop body
LE: loop exit
PB: predicated region body
PF: predicated region fallthrough
CT: control target
= control target key end

     0   :  { %s120_s0 = inlined_call_operand.vmem [shape: f32[8,16], index: 0, kind: input, shape index: {}]   ;;  %s121_s1 = inlined_call_operand.vmem [shape: s32[8,1], index: 1, kind: input, shape index: {}]   ;;  %s122_s2 = inlined_call_operand.hbm [shape: f32[1,1,128], index: 2, kind: output, shape index: {}]  }
   0x1   :  { %v13_v0 = vld [vmem:[%s121_s1] sm:$0xff] }
   0x2   :  { %7 = vsyncpa [#allocation3], 0  ;;  %v94_v1 = vmov 0   ;;  %v14_v2 = vlaneseq  ;;  %v12_v4 = vld [vmem:[%s120_s0] sm:$0xff]  ;;  %vm21_vm0 = vcmask 130048   ;;  %vm39_vm2 = vcmask 7168  }
   0x3   :  { %71 = vset.pattern.permute.xlu0 %v94_v1  ;;  %s95_s0 = smov [#allocation2]  }
   0x4   :  { %17 = vperm.xlu0 %71, %v13_v0   ;;  %v15_v3 = vand.u32 127, %v14_v2  ;;  %s59_s1 = sshll.u32 %s95_s0, 4  ;;  %s60_s1 = int_to_ptr.vmem [resolvable:$true] %s59_s1 }
   0x5   :  { %s72_s14 = scalar_lea.vmem %s60_s1, 16  ;;  %s76_s15 = scalar_lea.vmem %s60_s1, 32 }
   0x6   :  { %p73_p0 = scmp.ne.s32.totalorder %s60_s1, %s72_s14  ;;  %p77_p1 = scmp.lt.s32.totalorder %s60_s1, %s60_s1 }
   0x7   :  { %p78_p2 = scmp.lt.s32.totalorder %s76_s15, %s72_s14 }
   0x9   :  { %p79_p3 = por %p78_p2, %p77_p1 }
   0xb   :  { %p80_p4 = pnand %p79_p3, %p73_p0 }
  0x7f   :  { %v18_v5 = vpop.permute.xlu0 %17 }
  0x80   :  { %vm19_vm1 = vcmp.eq.s32.totalorder %v15_v3, %v18_v5 }
  0x81   :  { %v25_v6 = vsel %vm19_vm1, -1000.0, %v12_v4  ;;  %v20_v7 = vsel %vm19_vm1, %v12_v4, 0.0 }
  0x82   :  { %v26_v8 = vsel %vm21_vm0, %v25_v6, -inf  ;;  %v22_v9 = vsel %vm21_vm0, %v20_v7, 0.0 }
  0x83   :  { %27 = vmax.xlane.f32.xlu1 %v26_v8  ;;  %23 = vadd.xlane.f32.xlu0 %v22_v9 }
 0x10c   :  { %v28_v10 = vpop.xlane.xlu1 %27  ;;  %v24_v11 = vpop.xlane.xlu0 %23 }
 0x10d   :  { %v29_v12 = vsub.f32 %v24_v11, %v28_v10 }
 0x10f   :  { %v30_v13 = vadd.f32 50.0, %v29_v12 }
 0x111   :  { %v31_v14 = vmax.f32 %v30_v13, 0.0 }
 0x113   :  { %v40_v15 = vsel %vm39_vm2, %v31_v14, 0.0 }
 0x114   :  { %41 = vadd.xlane.f32.xlu1 %v40_v15 }
 0x19d   :  { %v42_v16 = vpop.xlane.xlu1 %41 }
 0x19e   :  { %v43_v17 = vrot.slane %v42_v16, 4 }
 0x1a0   :  { %v44_v18 = vadd.f32 %v43_v17, %v42_v16 }
 0x1a2   :  { %v45_v19 = vrot.slane %v44_v18, 2 }
 0x1a4   :  { %v46_v20 = vadd.f32 %v45_v19, %v44_v18 }
 0x1a6   :  { %v47_v21 = vrot.slane %v46_v20, 1 }
 0x1a8   :  { %v48_v22 = vadd.f32 %v47_v21, %v46_v20 }
 0x1aa   :  { %67 = vpush %v48_v22 }
 0x1db   :  { %s68_s13 = spop %67 }
 0x1dc   :  { %v50_v23 = vstv %s68_s13 }
 0x1dd   :  { %52 = vst [vmem:[#allocation2] sm:$0x1] %v50_v23 }
 0x1de   :  { %83 = shalt.err (!%p80_p4)
}
 0x1df   :  { %62 = dma.vmem_to_hbm [thread:$0]  %s60_s1, 16, %s122_s2, [#allocation3]  }
 0x1e0   :  { %92 = dma.done.wait [#allocation3], 16  }
 0x1e1   :  { %93 = vsyncadd [#allocation3], 4294967280 }
 0x1e2   :  { %66 = vsyncpa [#allocation3], 1 }

</bundles_post_ra>
